<compile_context>
chip_gen: v5e
topology: v5e:2x2
jax: 0.10.0
libtpu: 0.0.40
codegen_flags: <defaults>
</compile_context>

<pallas_src>
import functools

import jax
import jax.numpy as jnp
from jax.experimental import pallas as pl
from jax.experimental.pallas import tpu as pltpu


def _round_up(n, m):
    return ((n + m - 1) // m) * m


def _mlp2_kernel(x_ref, w1_ref, b1_ref, w2_ref, b2_ref, w3_ref, b3_ref, o_ref):
    x = x_ref[...]                                                      # (TB, Kp) bf16
    h1 = jnp.dot(x, w1_ref[...], preferred_element_type=jnp.float32) + b1_ref[...]
    h1 = h1.astype(jnp.bfloat16)                                        # (TB, 256)
    h2 = jnp.dot(h1, w2_ref[...], preferred_element_type=jnp.float32) + b2_ref[...]
    h2 = h2.astype(jnp.bfloat16)                                        # (TB, 256)
    out = jnp.dot(h2, w3_ref[...], preferred_element_type=jnp.float32) + b3_ref[...]
    o_ref[...] = out.astype(o_ref.dtype)                                # (TB, 128) lane-dense


def mlp2_forward(x, params, tb=512, out_features=10):
    """x: (B, ...) with prod(...) == 784. params: padded weights/biases from init_params."""
    b = x.shape[0]
    x2d = x.reshape(b, -1).astype(jnp.bfloat16)                         # (B, 784)

    w1, b1 = params["w1"], params["b1"]
    w2, b2 = params["w2"], params["b2"]
    w3, b3 = params["w3"], params["b3"]
    k_pad = w1.shape[0]                                                  # 896
    n_out_pad = w3.shape[1]                                              # 128

    # Pad features to the lane-aligned contraction dim (zeros x padded w1 rows == 0).
    if x2d.shape[1] != k_pad:
        x2d = jnp.pad(x2d, ((0, 0), (0, k_pad - x2d.shape[1])))

    # Batch tile: at least 8 rows (sublane alignment), capped at `tb`; pad B up to a multiple.
    tb = min(tb, _round_up(b, 8))
    b_pad = _round_up(b, tb)
    if b_pad != b:
        x2d = jnp.pad(x2d, ((0, b_pad - b), (0, 0)))

    grid = (b_pad // tb,)

    flops = 2 * b_pad * (k_pad * w1.shape[1]
                         + w2.shape[0] * w2.shape[1]
                         + w3.shape[0] * n_out_pad)
    bytes_accessed = (x2d.size * x2d.dtype.itemsize
                      + sum(int(p.size) * p.dtype.itemsize
                            for p in (w1, b1, w2, b2, w3, b3))
                      + b_pad * n_out_pad * 4)

    out = pl.pallas_call(
        _mlp2_kernel,
        out_shape=jax.ShapeDtypeStruct((b_pad, n_out_pad), jnp.float32),
        grid=grid,
        in_specs=[
            pl.BlockSpec((tb, k_pad), lambda i: (i, 0)),        # x tile: streamed per step
            pl.BlockSpec(w1.shape, lambda i: (0, 0)),           # weights/biases: VMEM-resident
            pl.BlockSpec(b1.shape, lambda i: (0, 0)),
            pl.BlockSpec(w2.shape, lambda i: (0, 0)),
            pl.BlockSpec(b2.shape, lambda i: (0, 0)),
            pl.BlockSpec(w3.shape, lambda i: (0, 0)),
            pl.BlockSpec(b3.shape, lambda i: (0, 0)),
        ],
        out_specs=pl.BlockSpec((tb, n_out_pad), lambda i: (i, 0)),
        compiler_params=pltpu.CompilerParams(
            dimension_semantics=("parallel",),
        ),
        cost_estimate=pl.CostEstimate(
            flops=flops, transcendentals=0, bytes_accessed=bytes_accessed),
    )(x2d, w1, b1, w2, b2, w3, b3)

    return out[:b, :out_features].astype(x.dtype)


def init_params(key, hidden_dim_1=200, hidden_dim_2=200, w_dtype=jnp.bfloat16):
    """PyTorch-Linear-style init U(-1/sqrt(fan_in), 1/sqrt(fan_in)), stored (in, out),
    zero-padded to lane-aligned sizes: in 784 -> 896, hidden -> mult of 128, out -> 128."""
    in_pad = _round_up(784, 128)                    # 896
    h1p = _round_up(hidden_dim_1, 128)
    h2p = _round_up(hidden_dim_2, 128)
    logical = [(784, hidden_dim_1), (hidden_dim_1, hidden_dim_2), (hidden_dim_2, 10)]
    padded = [(in_pad, h1p), (h1p, h2p), (h2p, 128)]

    params = {}
    for i, ((fi, fo), (pi_, po)) in enumerate(zip(logical, padded), start=1):
        key, kw, kb = jax.random.split(key, 3)
        bound = 1.0 / (fi ** 0.5)
        w = jax.random.uniform(kw, (fi, fo), jnp.float32, minval=-bound, maxval=bound)
        bias = jax.random.uniform(kb, (1, fo), jnp.float32, minval=-bound, maxval=bound)
        w_pad = jnp.zeros((pi_, po), jnp.float32).at[:fi, :fo].set(w)
        b_pad = jnp.zeros((1, po), jnp.float32).at[:, :fo].set(bias)
        params[f"w{i}"] = w_pad.astype(w_dtype)     # bf16 weights (padding stays exactly 0)
        params[f"b{i}"] = b_pad                     # f32 biases
    return params


def _ref_forward(x, params, out_features=10):
    """JAX reference replicating the kernel's numerics (bf16 operands, f32 accumulate)."""
    f32 = jnp.float32
    x2d = x.reshape(x.shape[0], -1).astype(jnp.bfloat16)
    k_pad = params["w1"].shape[0]
    if x2d.shape[1] != k_pad:
        x2d = jnp.pad(x2d, ((0, 0), (0, k_pad - x2d.shape[1])))
    x2d = x2d.astype(f32)
    h1 = (x2d @ params["w1"].astype(f32) + params["b1"]).astype(jnp.bfloat16).astype(f32)
    h2 = (h1 @ params["w2"].astype(f32) + params["b2"]).astype(jnp.bfloat16).astype(f32)
    out = h2 @ params["w3"].astype(f32) + params["b3"]
    return out[:, :out_features]


if __name__ == "__main__":
    key = jax.random.PRNGKey(0)
    kx, kp = jax.random.split(key)

    # Small MNIST-like batch in NCHW: (B=8, C=1, H=28, W=28) -> 784 features.
    x = jax.random.normal(kx, (8, 1, 28, 28), dtype=jnp.float32)
    params = init_params(kp)

    fwd = jax.jit(functools.partial(mlp2_forward, tb=512))
    out = jax.block_until_ready(fwd(x, params))

    ref = _ref_forward(x, params)
    assert out.shape == (8, 10), out.shape
    assert jnp.allclose(out, ref, atol=2e-2, rtol=2e-2), "mismatch vs JAX reference"

    print("KERNEL_OK")
</pallas_src>

<mosaic_0001>
module attributes {stable_mosaic.version = 11 : i64} {
  func.func @_mlp2_kernel(%arg0: i32, %arg1: memref<8x896xbf16, #tpu.memory_space<vmem>>, %arg2: memref<896x256xbf16, #tpu.memory_space<vmem>>, %arg3: memref<1x256xf32, #tpu.memory_space<vmem>>, %arg4: memref<256x256xbf16, #tpu.memory_space<vmem>>, %arg5: memref<1x256xf32, #tpu.memory_space<vmem>>, %arg6: memref<256x128xbf16, #tpu.memory_space<vmem>>, %arg7: memref<1x128xf32, #tpu.memory_space<vmem>>, %arg8: memref<8x128xf32, #tpu.memory_space<vmem>>) attributes {dimension_semantics = [#tpu.dimension_semantics<parallel>], iteration_bounds = array<i64: 1>, scalar_prefetch = 0 : i64, scratch_operands = 0 : i64, tpu.core_type = #tpu.core_type<tc>, window_params = [{transform_indices = @transform_0, window_bounds = array<i64: 8, 896>}, {pipeline_mode = #tpu.pipeline_mode<synchronous>, transform_indices = @transform_1, window_bounds = array<i64: 896, 256>}, {pipeline_mode = #tpu.pipeline_mode<synchronous>, transform_indices = @transform_2, window_bounds = array<i64: 1, 256>}, {pipeline_mode = #tpu.pipeline_mode<synchronous>, transform_indices = @transform_3, window_bounds = array<i64: 256, 256>}, {pipeline_mode = #tpu.pipeline_mode<synchronous>, transform_indices = @transform_4, window_bounds = array<i64: 1, 256>}, {pipeline_mode = #tpu.pipeline_mode<synchronous>, transform_indices = @transform_5, window_bounds = array<i64: 256, 128>}, {pipeline_mode = #tpu.pipeline_mode<synchronous>, transform_indices = @transform_6, window_bounds = array<i64: 1, 128>}, {transform_indices = @transform_7, window_bounds = array<i64: 8, 128>}]} {
    %c0 = arith.constant 0 : index
    %c0_0 = arith.constant 0 : index
    %0 = vector.load %arg1[%c0, %c0_0] : memref<8x896xbf16, #tpu.memory_space<vmem>>, vector<8x896xbf16>
    %c0_1 = arith.constant 0 : index
    %c0_2 = arith.constant 0 : index
    %1 = vector.load %arg2[%c0_1, %c0_2] : memref<896x256xbf16, #tpu.memory_space<vmem>>, vector<896x256xbf16>
    %cst = arith.constant dense<0.000000e+00> : vector<8x256xf32>
    %2 = tpu.matmul %0, %1, %cst {dimension_numbers = #tpu.dot_dimension_numbers<[1], [0], [0], [1], [0, 0, 1, 1], [], []>} : vector<8x896xbf16>, vector<896x256xbf16>, vector<8x256xf32> -> vector<8x256xf32>
    %c0_3 = arith.constant 0 : index
    %c0_4 = arith.constant 0 : index
    %3 = vector.load %arg3[%c0_3, %c0_4] : memref<1x256xf32, #tpu.memory_space<vmem>>, vector<1x256xf32>
    %4 = vector.broadcast %3 : vector<1x256xf32> to vector<8x256xf32>
    %5 = arith.addf %2, %4 : vector<8x256xf32>
    %6 = arith.truncf %5 : vector<8x256xf32> to vector<8x256xbf16>
    %c0_5 = arith.constant 0 : index
    %c0_6 = arith.constant 0 : index
    %7 = vector.load %arg4[%c0_5, %c0_6] : memref<256x256xbf16, #tpu.memory_space<vmem>>, vector<256x256xbf16>
    %cst_7 = arith.constant dense<0.000000e+00> : vector<8x256xf32>
    %8 = tpu.matmul %6, %7, %cst_7 {dimension_numbers = #tpu.dot_dimension_numbers<[1], [0], [0], [1], [0, 0, 1, 1], [], []>} : vector<8x256xbf16>, vector<256x256xbf16>, vector<8x256xf32> -> vector<8x256xf32>
    %c0_8 = arith.constant 0 : index
    %c0_9 = arith.constant 0 : index
    %9 = vector.load %arg5[%c0_8, %c0_9] : memref<1x256xf32, #tpu.memory_space<vmem>>, vector<1x256xf32>
    %10 = vector.broadcast %9 : vector<1x256xf32> to vector<8x256xf32>
    %11 = arith.addf %8, %10 : vector<8x256xf32>
    %12 = arith.truncf %11 : vector<8x256xf32> to vector<8x256xbf16>
    %c0_10 = arith.constant 0 : index
    %c0_11 = arith.constant 0 : index
    %13 = vector.load %arg6[%c0_10, %c0_11] : memref<256x128xbf16, #tpu.memory_space<vmem>>, vector<256x128xbf16>
    %cst_12 = arith.constant dense<0.000000e+00> : vector<8x128xf32>
    %14 = tpu.matmul %12, %13, %cst_12 {dimension_numbers = #tpu.dot_dimension_numbers<[1], [0], [0], [1], [0, 0, 1, 1], [], []>} : vector<8x256xbf16>, vector<256x128xbf16>, vector<8x128xf32> -> vector<8x128xf32>
    %c0_13 = arith.constant 0 : index
    %c0_14 = arith.constant 0 : index
    %15 = vector.load %arg7[%c0_13, %c0_14] : memref<1x128xf32, #tpu.memory_space<vmem>>, vector<1x128xf32>
    %16 = vector.broadcast %15 : vector<1x128xf32> to vector<8x128xf32>
    %17 = arith.addf %14, %16 : vector<8x128xf32>
    %c0_15 = arith.constant 0 : index
    %c0_16 = arith.constant 0 : index
    %18 = vector.load %arg8[%c0_15, %c0_16] : memref<8x128xf32, #tpu.memory_space<vmem>>, vector<8x128xf32>
    tpu.vector_store %arg8[%c0_15, %c0_16], %17 {strides = array<i32>} : memref<8x128xf32, #tpu.memory_space<vmem>>, vector<8x128xf32>,
    return
  }
  func.func @transform_0(%arg0: i32) -> (i32, i32) {
    %c0_i32 = arith.constant 0 : i32
    %c0_i32_0 = arith.constant 0 : i32
    return %arg0, %c0_i32 : i32, i32
  }
  func.func @transform_1(%arg0: i32) -> (i32, i32) {
    %c0_i32 = arith.constant 0 : i32
    %c0_i32_0 = arith.constant 0 : i32
    %c0_i32_1 = arith.constant 0 : i32
    return %c0_i32, %c0_i32_0 : i32, i32
  }
  func.func @transform_2(%arg0: i32) -> (i32, i32) {
    %c0_i32 = arith.constant 0 : i32
    %c0_i32_0 = arith.constant 0 : i32
    %c0_i32_1 = arith.constant 0 : i32
    return %c0_i32, %c0_i32_0 : i32, i32
  }
  func.func @transform_3(%arg0: i32) -> (i32, i32) {
    %c0_i32 = arith.constant 0 : i32
    %c0_i32_0 = arith.constant 0 : i32
    %c0_i32_1 = arith.constant 0 : i32
    return %c0_i32, %c0_i32_0 : i32, i32
  }
  func.func @transform_4(%arg0: i32) -> (i32, i32) {
    %c0_i32 = arith.constant 0 : i32
    %c0_i32_0 = arith.constant 0 : i32
    %c0_i32_1 = arith.constant 0 : i32
    return %c0_i32, %c0_i32_0 : i32, i32
  }
  func.func @transform_5(%arg0: i32) -> (i32, i32) {
    %c0_i32 = arith.constant 0 : i32
    %c0_i32_0 = arith.constant 0 : i32
    %c0_i32_1 = arith.constant 0 : i32
    return %c0_i32, %c0_i32_0 : i32, i32
  }
  func.func @transform_6(%arg0: i32) -> (i32, i32) {
    %c0_i32 = arith.constant 0 : i32
    %c0_i32_0 = arith.constant 0 : i32
    %c0_i32_1 = arith.constant 0 : i32
    return %c0_i32, %c0_i32_0 : i32, i32
  }
  func.func @transform_7(%arg0: i32) -> (i32, i32) {
    %c0_i32 = arith.constant 0 : i32
    %c0_i32_0 = arith.constant 0 : i32
    return %arg0, %c0_i32 : i32, i32
  }
}

</mosaic_0001>

<bundles_post_ra>
// kernel: mlp2_forward.1
= control target key start
LH: loop header
LB: loop body
LE: loop exit
PB: predicated region body
PF: predicated region fallthrough
CT: control target
= control target key end

     0   :  { %12 = vsyncpa [#allocation3], 0  ;;  %s2562_s0 = inlined_call_operand.vmem [shape: bf16[8,896], index: 0, kind: input, shape index: {}]   ;;  %s2563_s1 = inlined_call_operand.hbm [shape: bf16[896,256], index: 1, kind: input, shape index: {}]   ;;  %s2564_s2 = inlined_call_operand.vmem [shape: f32[1,256], index: 2, kind: input, shape index: {}]   ;;  %s2565_s3 = inlined_call_operand.vmem [shape: bf16[256,256], index: 3, kind: input, shape index: {}]   ;;  %s2566_s4 = inlined_call_operand.vmem [shape: f32[1,256], index: 4, kind: input, shape index: {}]   ;;  %s2567_s5 = inlined_call_operand.vmem [shape: bf16[256,128], index: 5, kind: input, shape index: {}]   ;;  %s2568_s6 = inlined_call_operand.vmem [shape: f32[1,128], index: 6, kind: input, shape index: {}]   ;;  %s2569_s7 = inlined_call_operand.hbm [shape: f32[8,128], index: 7, kind: output, shape index: {}]  }
   0x1   :  { %13 = vsyncpa [#allocation4], 0  ;;  %s20_s26 = sshll.u32 %s2563_s1, 4  ;;  %s2219_s27 = smov [#allocation2]   ;;  %s21_s26 = int_to_ptr.hbm [resolvable:$true] %s20_s26 }
   0x2   :  { %s22_s28 = sshll.u32 %s2219_s27, 4  ;;  %s2220_s29 = smov 128   ;;  %s23_s28 = int_to_ptr.vmem [resolvable:$true] %s22_s28 }
   0x3   :  { %s2221_s30 = smov 8  }
   0x4   :  { %28 = dma.hbm_to_vmem [thread:$0]  %s21_s26, 14336, %s23_s28, [#allocation3], %s2220_s29, %s2220_s29, %s2221_s30  }
   0x5   :  { %2215 = dma.done.wait [#allocation3], 14336  }
   0x6   :  { %2216 = vsyncadd [#allocation3], 4294952960  ;;  %v1420_v0 = vld [vmem:[#allocation2 + $0x70] sm:$0xf]  ;;  %v2017_v1 = vld [vmem:[#allocation2 + $0x74] sm:$0xf0] }
   0x7   :  { %v1484_v2 = vld [vmem:[#allocation2 + $0xf0] sm:$0xf]  ;;  %v1421_v3 = vor.u32 %v2017_v1, %v1420_v0  ;;  %v2033_v4 = vld [vmem:[#allocation2 + $0xf4] sm:$0xf0]  ;;  %v1412_v9 = vld [vmem:[#allocation2 + $0x60] sm:$0xf] }
   0x8   :  { %v1548_v5 = vld [vmem:[#allocation2 + $0x170] sm:$0xf]  ;;  %v2049_v6 = vld [vmem:[#allocation2 + $0x174] sm:$0xf0]  ;;  %v1485_v7 = vor.u32 %v2033_v4, %v1484_v2  ;;  %v2015_v10 = vld [vmem:[#allocation2 + $0x64] sm:$0xf0] }
   0x9   :  { %v1549_v8 = vor.u32 %v2049_v6, %v1548_v5  ;;  %v1476_v11 = vld [vmem:[#allocation2 + $0xe0] sm:$0xf]  ;;  %750 = vmatpush.bf16.msra.mxu0 %v1421_v3  ;;  %v1413_v12 = vor.u32 %v2015_v10, %v1412_v9  ;;  %v2031_v13 = vld [vmem:[#allocation2 + $0xe4] sm:$0xf0]  ;;  %v1404_v18 = vld [vmem:[#allocation2 + $0x50] sm:$0xf] }
   0xa   :  { %v1540_v14 = vld [vmem:[#allocation2 + $0x160] sm:$0xf]  ;;  %v2047_v15 = vld [vmem:[#allocation2 + $0x164] sm:$0xf0]  ;;  %763 = vmatpush.bf16.msra.mxu1 %v1485_v7  ;;  %v1477_v16 = vor.u32 %v2031_v13, %v1476_v11  ;;  %v2013_v19 = vld [vmem:[#allocation2 + $0x54] sm:$0xf0] }
   0xb   :  { %776 = vmatpush.bf16.msra.mxu2 %v1549_v8  ;;  %v1541_v17 = vor.u32 %v2047_v15, %v1540_v14  ;;  %v1468_v20 = vld [vmem:[#allocation2 + $0xd0] sm:$0xf]  ;;  %v2029_v21 = vld [vmem:[#allocation2 + $0xd4] sm:$0xf0]  ;;  %v1405_v24 = vor.u32 %v2013_v19, %v1404_v18  ;;  %v1396_v25 = vld [vmem:[#allocation2 + $0x40] sm:$0xf] }
   0xc   :  { %v1532_v22 = vld [vmem:[#allocation2 + $0x150] sm:$0xf]  ;;  %v2045_v23 = vld [vmem:[#allocation2 + $0x154] sm:$0xf0]  ;;  %v2011_v26 = vld [vmem:[#allocation2 + $0x44] sm:$0xf0]  ;;  %v1469_v27 = vor.u32 %v2029_v21, %v1468_v20 }
   0xd   :  { %751 = vmatpush.bf16.msra.mxu0 %v1413_v12  ;;  %v1533_v28 = vor.u32 %v2045_v23, %v1532_v22  ;;  %v1460_v29 = vld [vmem:[#allocation2 + $0xc0] sm:$0xf]  ;;  %v1612_v30 = vld [vmem:[#allocation2 + $0x1f0] sm:$0xf]  ;;  %v2065_v31 = vld [vmem:[#allocation2 + $0x1f4] sm:$0xf0]  ;;  %v1397_v37 = vor.u32 %v2011_v26, %v1396_v25 }
   0xe   :  { %764 = vmatpush.bf16.msra.mxu1 %v1477_v16  ;;  %v2027_v32 = vld [vmem:[#allocation2 + $0xc4] sm:$0xf0]  ;;  %v1524_v33 = vld [vmem:[#allocation2 + $0x140] sm:$0xf]  ;;  %v1613_v35 = vor.u32 %v2065_v31, %v1612_v30  ;;  %v1388_v38 = vld [vmem:[#allocation2 + $0x30] sm:$0xf] }
   0xf   :  { %777 = vmatpush.bf16.msra.mxu2 %v1541_v17  ;;  %v2043_v34 = vld [vmem:[#allocation2 + $0x144] sm:$0xf0]  ;;  %v1604_v36 = vld [vmem:[#allocation2 + $0x1e0] sm:$0xf]  ;;  %v2009_v39 = vld [vmem:[#allocation2 + $0x34] sm:$0xf0]  ;;  %v1461_v41 = vor.u32 %v2027_v32, %v1460_v29 }
  0x10   :  { %789 = vmatpush.bf16.msra.mxu3 %v1613_v35  ;;  %v2063_v40 = vld [vmem:[#allocation2 + $0x1e4] sm:$0xf0]  ;;  %v1525_v42 = vor.u32 %v2043_v34, %v1524_v33  ;;  %v1452_v43 = vld [vmem:[#allocation2 + $0xb0] sm:$0xf]  ;;  %v2025_v44 = vld [vmem:[#allocation2 + $0xb4] sm:$0xf0]  ;;  %v1389_v50 = vor.u32 %v2009_v39, %v1388_v38 }
  0x11   :  { %752 = vmatpush.bf16.msra.mxu0 %v1405_v24  ;;  %v1516_v45 = vld [vmem:[#allocation2 + $0x130] sm:$0xf]  ;;  %v1605_v46 = vor.u32 %v2063_v40, %v1604_v36  ;;  %v2041_v47 = vld [vmem:[#allocation2 + $0x134] sm:$0xf0]  ;;  %v1380_v51 = vld [vmem:[#allocation2 + $0x20] sm:$0xf]  ;;  %v1453_v54 = vor.u32 %v2025_v44, %v1452_v43 }
  0x12   :  { %765 = vmatpush.bf16.msra.mxu1 %v1469_v27  ;;  %v1596_v48 = vld [vmem:[#allocation2 + $0x1d0] sm:$0xf]  ;;  %v2061_v49 = vld [vmem:[#allocation2 + $0x1d4] sm:$0xf0]  ;;  %v2007_v52 = vld [vmem:[#allocation2 + $0x24] sm:$0xf0]  ;;  %v1517_v55 = vor.u32 %v2041_v47, %v1516_v45 }
  0x13   :  { %778 = vmatpush.bf16.msra.mxu2 %v1533_v28  ;;  %v1597_v53 = vor.u32 %v2061_v49, %v1596_v48  ;;  %v1444_v56 = vld [vmem:[#allocation2 + $0xa0] sm:$0xf]  ;;  %v2059_v58 = vld [vmem:[#allocation2 + $0x1c4] sm:$0xf0]  ;;  %v1381_v62 = vor.u32 %v2007_v52, %v1380_v51  ;;  %v1372_v63 = vld [vmem:[#allocation2 + $0x10] sm:$0xf] }
  0x14   :  { %790 = vmatpush.bf16.msra.mxu3 %v1605_v46  ;;  %v1588_v57 = vld [vmem:[#allocation2 + $0x1c0] sm:$0xf]  ;;  %v2023_v59 = vld [vmem:[#allocation2 + $0xa4] sm:$0xf0]  ;;  %v2005_v0 = vld [vmem:[#allocation2 + $0x14] sm:$0xf0] }
  0x15   :  { %753 = vmatpush.bf16.msra.mxu0 %v1397_v37  ;;  %v1508_v60 = vld [vmem:[#allocation2 + $0x120] sm:$0xf]  ;;  %v2039_v61 = vld [vmem:[#allocation2 + $0x124] sm:$0xf0]  ;;  %v1589_v1 = vor.u32 %v2059_v58, %v1588_v57  ;;  %v1445_v2 = vor.u32 %v2023_v59, %v1444_v56  ;;  %v1436_v4 = vld [vmem:[#allocation2 + $0x90] sm:$0xf]  ;;  %v1373_v10 = vor.u32 %v2005_v0, %v1372_v63 }
  0x16   :  { %766 = vmatpush.bf16.msra.mxu1 %v1461_v41  ;;  %v1509_v3 = vor.u32 %v2039_v61, %v1508_v60  ;;  %v1580_v5 = vld [vmem:[#allocation2 + $0x1b0] sm:$0xf]  ;;  %v2057_v6 = vld [vmem:[#allocation2 + $0x1b4] sm:$0xf0]  ;;  %v1364_v11 = vld [vmem:[#allocation2] sm:$0xf] }
  0x17   :  { %779 = vmatpush.bf16.msra.mxu2 %v1525_v42  ;;  %v2021_v7 = vld [vmem:[#allocation2 + $0x94] sm:$0xf0]  ;;  %v1500_v8 = vld [vmem:[#allocation2 + $0x110] sm:$0xf]  ;;  %v2003_v12 = vld [vmem:[#allocation2 + $0x4] sm:$0xf0]  ;;  %v1581_v14 = vor.u32 %v2057_v6, %v1580_v5 }
  0x18   :  { %791 = vmatpush.bf16.msra.mxu3 %v1597_v53  ;;  %v2037_v9 = vld [vmem:[#allocation2 + $0x114] sm:$0xf0]  ;;  %v1428_v13 = vld [vmem:[#allocation2 + $0x80] sm:$0xf]  ;;  %v1437_v15 = vor.u32 %v2021_v7, %v1436_v4  ;;  %v2019_v17 = vld [vmem:[#allocation2 + $0x84] sm:$0xf0]  ;;  %v1365_v26 = vor.u32 %v2003_v12, %v1364_v11 }
  0x19   :  { %754 = vmatpush.bf16.msra.mxu0 %v1389_v50  ;;  %v1501_v16 = vor.u32 %v2037_v9, %v1500_v8  ;;  %v1572_v18 = vld [vmem:[#allocation2 + $0x1a0] sm:$0xf]  ;;  %v2055_v19 = vld [vmem:[#allocation2 + $0x1a4] sm:$0xf0]  ;;  %v1676_v22 = vld [vmem:[#allocation2 + $0x270] sm:$0xf]  ;;  %v1429_v30 = vor.u32 %v2019_v17, %v1428_v13 }
  0x1a   :  { %767 = vmatpush.bf16.msra.mxu1 %v1453_v54  ;;  %v1492_v20 = vld [vmem:[#allocation2 + $0x100] sm:$0xf]  ;;  %v2035_v21 = vld [vmem:[#allocation2 + $0x104] sm:$0xf0]  ;;  %v2081_v23 = vld [vmem:[#allocation2 + $0x274] sm:$0xf0]  ;;  %v1573_v29 = vor.u32 %v2055_v19, %v1572_v18 }
  0x1b   :  { %780 = vmatpush.bf16.msra.mxu2 %v1517_v55  ;;  %v1740_v24 = vld [vmem:[#allocation2 + $0x2f0] sm:$0xf]  ;;  %v2097_v25 = vld [vmem:[#allocation2 + $0x2f4] sm:$0xf0]  ;;  %v1493_v31 = vor.u32 %v2035_v21, %v1492_v20  ;;  %v1677_v34 = vor.u32 %v2081_v23, %v1676_v22  ;;  %v1668_v36 = vld [vmem:[#allocation2 + $0x260] sm:$0xf] }
  0x1c   :  { %792 = vmatpush.bf16.msra.mxu3 %v1589_v1  ;;  %v1804_v27 = vld [vmem:[#allocation2 + $0x370] sm:$0xf]  ;;  %v2113_v28 = vld [vmem:[#allocation2 + $0x374] sm:$0xf0]  ;;  %v1741_v35 = vor.u32 %v2097_v25, %v1740_v24  ;;  %v2079_v37 = vld [vmem:[#allocation2 + $0x264] sm:$0xf0] }
  0x1d   :  { %755 = vmatpush.bf16.msra.mxu0 %v1381_v62  ;;  %v1564_v32 = vld [vmem:[#allocation2 + $0x190] sm:$0xf]  ;;  %v2053_v33 = vld [vmem:[#allocation2 + $0x194] sm:$0xf0]  ;;  %v1805_v38 = vor.u32 %v2113_v28, %v1804_v27  ;;  %v1732_v39 = vld [vmem:[#allocation2 + $0x2e0] sm:$0xf]  ;;  %v1669_v46 = vor.u32 %v2079_v37, %v1668_v36 }
  0x1e   :  { %768 = vmatpush.bf16.msra.mxu1 %v1445_v2  ;;  %v2095_v40 = vld [vmem:[#allocation2 + $0x2e4] sm:$0xf0]  ;;  %v1796_v42 = vld [vmem:[#allocation2 + $0x360] sm:$0xf]  ;;  %v1565_v44 = vor.u32 %v2053_v33, %v1564_v32  ;;  %v1660_v51 = vld [vmem:[#allocation2 + $0x250] sm:$0xf] }
  0x1f   :  { %781 = vmatpush.bf16.msra.mxu2 %v1509_v3  ;;  %v44_v41 = vld [vmem:[%s2562_s0 + $0x8] sm:$0xff]  ;;  %v1556_v47 = vld [vmem:[#allocation2 + $0x180] sm:$0xf]  ;;  %v1733_v50 = vor.u32 %v2095_v40, %v1732_v39  ;;  %v2016_v52 = vld [vmem:[#allocation2 + $0x74] sm:$0xf]  ;;  %s1352_s26 = sshll.u32 %s2569_s7, 4  ;;  %s1353_s26 = int_to_ptr.hbm [resolvable:$true] %s1352_s26 }
  0x20   :  { %793 = vmatpush.bf16.msra.mxu3 %v1581_v14  ;;  %v2111_v43 = vld [vmem:[#allocation2 + $0x364] sm:$0xf0]  ;;  %v171_v45 = vunpack.c.l.b16 %v44_v41  ;;  %v43_v49 = vld [vmem:[%s2562_s0] sm:$0xff]  ;;  %v1422_v53 = vld [vmem:[#allocation2 + $0x78] sm:$0xf0]  ;;  %v172_v61 = vunpack.c.h.b16 %v44_v41 }
  0x21   :  { %756 = vmatpush.bf16.msra.mxu0 %v1373_v10  ;;  %v2051_v48 = vld [vmem:[#allocation2 + $0x184] sm:$0xf0]  ;;  %v169_v55 = vunpack.c.l.b16 %v43_v49  ;;  %v170_v56 = vunpack.c.h.b16 %v43_v49  ;;  %v1797_v57 = vor.u32 %v2111_v43, %v1796_v42  ;;  %v2077_v58 = vld [vmem:[#allocation2 + $0x254] sm:$0xf0]  ;;  %v1724_v59 = vld [vmem:[#allocation2 + $0x2d0] sm:$0xf]  ;;  %v1425_v3 = vor.u32 %v2016_v52, %v1422_v53 }
  0x22   :  { %769 = vmatpush.bf16.msra.mxu1 %v1437_v15  ;;  %v2272_v54 = vpack.c.b16 %v171_v45, %v171_v45  ;;  %v2093_v60 = vld [vmem:[#allocation2 + $0x2d4] sm:$0xf0]  ;;  %v1788_v62 = vld [vmem:[#allocation2 + $0x350] sm:$0xf]  ;;  %v1557_v0 = vor.u32 %v2051_v48, %v1556_v47  ;;  %v1661_v4 = vor.u32 %v2077_v58, %v1660_v51  ;;  %v1652_v6 = vld [vmem:[#allocation2 + $0x240] sm:$0xf]  ;;  %v2280_v13 = vpack.c.b16 %v172_v61, %v172_v61 }
  0x23   :  { %782 = vmatpush.bf16.msra.mxu2 %v1501_v16  ;;  %v2109_v63 = vld [vmem:[#allocation2 + $0x354] sm:$0xf0]  ;;  %v2275_v1 = vpack.c.b16 %v169_v55, %v169_v55  ;;  %v2277_v2 = vpack.c.b16 %v170_v56, %v170_v56  ;;  %v1725_v5 = vor.u32 %v2093_v60, %v1724_v59  ;;  %v2014_v7 = vld [vmem:[#allocation2 + $0x64] sm:$0xf]  ;;  %v1414_v8 = vld [vmem:[#allocation2 + $0x68] sm:$0xf0] }
  0x24   :  { %794 = vmatpush.bf16.msra.mxu3 %v1573_v29  ;;  %v1789_v9 = vor.u32 %v2109_v63, %v1788_v62  ;;  %v2075_v10 = vld [vmem:[#allocation2 + $0x244] sm:$0xf0]  ;;  %v1716_v11 = vld [vmem:[#allocation2 + $0x2c0] sm:$0xf]  ;;  %v1417_v16 = vor.u32 %v2014_v7, %v1414_v8  ;;  %v1644_v19 = vld [vmem:[#allocation2 + $0x230] sm:$0xf] }
  0x25   :  { %757 = vmatpush.bf16.msra.mxu0 %v1365_v26  ;;  %v2091_v12 = vld [vmem:[#allocation2 + $0x2c4] sm:$0xf0]  ;;  %v1780_v14 = vld [vmem:[#allocation2 + $0x340] sm:$0xf]  ;;  %v1653_v17 = vor.u32 %v2075_v10, %v1652_v6  ;;  %v2012_v20 = vld [vmem:[#allocation2 + $0x54] sm:$0xf] }
  0x26   :  { %770 = vmatpush.bf16.msra.mxu1 %v1429_v30  ;;  %v2107_v15 = vld [vmem:[#allocation2 + $0x344] sm:$0xf0]  ;;  %v1717_v18 = vor.u32 %v2091_v12, %v1716_v11  ;;  %v1406_v21 = vld [vmem:[#allocation2 + $0x58] sm:$0xf0]  ;;  %v2073_v23 = vld [vmem:[#allocation2 + $0x234] sm:$0xf0] }
  0x27   :  { %783 = vmatpush.bf16.msra.mxu2 %v1493_v31  ;;  %v1781_v22 = vor.u32 %v2107_v15, %v1780_v14  ;;  %v1708_v24 = vld [vmem:[#allocation2 + $0x2b0] sm:$0xf]  ;;  %v2089_v25 = vld [vmem:[#allocation2 + $0x2b4] sm:$0xf0]  ;;  %v1409_v28 = vor.u32 %v2012_v20, %v1406_v21  ;;  %v1645_v29 = vor.u32 %v2073_v23, %v1644_v19  ;;  %v1636_v31 = vld [vmem:[#allocation2 + $0x220] sm:$0xf] }
  0x28   :  { %795 = vmatpush.bf16.msra.mxu3 %v1565_v44  ;;  %758 = vmatmul.bf16.vlgmr.msra.gmra.mxu0 %v2275_v1  ;;  %v1772_v26 = vld [vmem:[#allocation2 + $0x330] sm:$0xf]  ;;  %v2105_v27 = vld [vmem:[#allocation2 + $0x334] sm:$0xf0]  ;;  %v1709_v30 = vor.u32 %v2089_v25, %v1708_v24  ;;  %v2010_v32 = vld [vmem:[#allocation2 + $0x44] sm:$0xf] }
  0x29   :  { %802 = vmatpush.bf16.msrb.mxu0 %v1677_v34  ;;  %771 = vmatmul.bf16.vlgmr.msra.gmra.mxu1 %v2277_v2  ;;  %v1398_v33 = vld [vmem:[#allocation2 + $0x48] sm:$0xf0]  ;;  %v1773_v34 = vor.u32 %v2105_v27, %v1772_v26  ;;  %v1700_v36 = vld [vmem:[#allocation2 + $0x2a0] sm:$0xf]  ;;  %v2087_v37 = vld [vmem:[#allocation2 + $0x2a4] sm:$0xf0] }
  0x2a   :  { %815 = vmatpush.bf16.msrb.mxu1 %v1741_v35  ;;  %784 = vmatmul.bf16.vlgmr.msra.gmra.mxu2 %v2272_v54  ;;  %v2071_v35 = vld [vmem:[#allocation2 + $0x224] sm:$0xf0]  ;;  %v1401_v40 = vor.u32 %v2010_v32, %v1398_v33  ;;  %v1701_v42 = vor.u32 %v2087_v37, %v1700_v36  ;;  %v1628_v43 = vld [vmem:[#allocation2 + $0x210] sm:$0xf]  ;;  %v2008_v44 = vld [vmem:[#allocation2 + $0x34] sm:$0xf] }
  0x2b   :  { %828 = vmatpush.bf16.msrb.mxu2 %v1805_v38  ;;  %v1764_v38 = vld [vmem:[#allocation2 + $0x320] sm:$0xf]  ;;  %v2103_v39 = vld [vmem:[#allocation2 + $0x324] sm:$0xf0]  ;;  %v1637_v41 = vor.u32 %v2071_v35, %v1636_v31  ;;  %v1390_v45 = vld [vmem:[#allocation2 + $0x38] sm:$0xf0] }
  0x2c   :  { %796 = vmatpush.bf16.msra.mxu3 %v1557_v0  ;;  %v2069_v47 = vld [vmem:[#allocation2 + $0x214] sm:$0xf0]  ;;  %v1692_v48 = vld [vmem:[#allocation2 + $0x290] sm:$0xf]  ;;  %v1620_v52 = vld [vmem:[#allocation2 + $0x200] sm:$0xf] }
  0x2d   :  { %803 = vmatpush.bf16.msrb.mxu0 %v1669_v46  ;;  %v1765_v46 = vor.u32 %v2103_v39, %v1764_v38  ;;  %v2085_v49 = vld [vmem:[#allocation2 + $0x294] sm:$0xf0]  ;;  %v2067_v53 = vld [vmem:[#allocation2 + $0x204] sm:$0xf0]  ;;  %v1684_v55 = vld [vmem:[#allocation2 + $0x280] sm:$0xf]  ;;  %v1629_v58 = vor.u32 %v2069_v47, %v1628_v43 }
  0x2e   :  { %816 = vmatpush.bf16.msrb.mxu1 %v1733_v50  ;;  %v1756_v50 = vld [vmem:[#allocation2 + $0x310] sm:$0xf]  ;;  %v2101_v51 = vld [vmem:[#allocation2 + $0x314] sm:$0xf0]  ;;  %v2083_v56 = vld [vmem:[#allocation2 + $0x284] sm:$0xf0]  ;;  %v1693_v59 = vor.u32 %v2085_v49, %v1692_v48  ;;  %v1621_v15 = vor.u32 %v2067_v53, %v1620_v52 }
  0x2f   :  { %829 = vmatpush.bf16.msrb.mxu2 %v1797_v57  ;;  %797 = vmatmul.bf16.vlgmr.msra.gmra.mxu3 %v2280_v13  ;;  %v1393_v57 = vor.u32 %v2008_v44, %v1390_v45  ;;  %v45_v60 = vld [vmem:[%s2562_s0 + $0x10] sm:$0xff]  ;;  %v2006_v61 = vld [vmem:[#allocation2 + $0x24] sm:$0xf]  ;;  %v1382_v62 = vld [vmem:[#allocation2 + $0x28] sm:$0xf0]  ;;  %v1757_v63 = vor.u32 %v2101_v51, %v1756_v50 }
  0x30   :  { %841 = vmatpush.bf16.msrb.mxu3 %v1425_v3  ;;  %v1748_v0 = vld [vmem:[#allocation2 + $0x300] sm:$0xf]  ;;  %v2099_v3 = vld [vmem:[#allocation2 + $0x304] sm:$0xf0]  ;;  %v1486_v6 = vld [vmem:[#allocation2 + $0xf8] sm:$0xf0]  ;;  %v1385_v10 = vor.u32 %v2006_v61, %v1382_v62  ;;  %v174_v11 = vunpack.c.h.b16 %v45_v60 }
  0x31   :  { %804 = vmatpush.bf16.msrb.mxu0 %v1661_v4  ;;  %v46_v4 = vld [vmem:[%s2562_s0 + $0x18] sm:$0xf]  ;;  %v2048_v7 = vld [vmem:[#allocation2 + $0x174] sm:$0xf]  ;;  %v1550_v8 = vld [vmem:[#allocation2 + $0x178] sm:$0xf0] }
  0x32   :  { %817 = vmatpush.bf16.msrb.mxu1 %v1725_v5  ;;  %v2032_v5 = vld [vmem:[#allocation2 + $0xf4] sm:$0xf]  ;;  %v1614_v14 = vld [vmem:[#allocation2 + $0x1f8] sm:$0xf0]  ;;  %v2030_v23 = vld [vmem:[#allocation2 + $0xe4] sm:$0xf] }
  0x33   :  { %830 = vmatpush.bf16.msrb.mxu2 %v1789_v9  ;;  %v173_v9 = vunpack.c.l.b16 %v45_v60  ;;  %v2064_v12 = vld [vmem:[#allocation2 + $0x1f4] sm:$0xf]  ;;  %v1489_v19 = vor.u32 %v2032_v5, %v1486_v6  ;;  %v1374_v21 = vld [vmem:[#allocation2 + $0x18] sm:$0xf0]  ;;  %v1478_v24 = vld [vmem:[#allocation2 + $0xe8] sm:$0xf0] }
  0x34   :  { %842 = vmatpush.bf16.msrb.mxu3 %v1417_v16  ;;  %v1685_v16 = vor.u32 %v2083_v56, %v1684_v55  ;;  %v2004_v20 = vld [vmem:[#allocation2 + $0x14] sm:$0xf]  ;;  %v2046_v25 = vld [vmem:[#allocation2 + $0x164] sm:$0xf]  ;;  %v1617_v26 = vor.u32 %v2064_v12, %v1614_v14  ;;  %v1606_v31 = vld [vmem:[#allocation2 + $0x1e8] sm:$0xf0]  ;;  %v1481_v35 = vor.u32 %v2030_v23, %v1478_v24 }
  0x35   :  { %805 = vmatpush.bf16.msrb.mxu0 %v1653_v17  ;;  %v175_v17 = vunpack.c.l.b16 %v46_v4  ;;  %v2290_v27 = vpack.c.b16 %v173_v9, %v173_v9  ;;  %v1377_v33 = vor.u32 %v2004_v20, %v1374_v21  ;;  %v1470_v36 = vld [vmem:[#allocation2 + $0xd8] sm:$0xf0]  ;;  %v2002_v37 = vld [vmem:[#allocation2 + $0x4] sm:$0xf]  ;;  %v1366_v38 = vld [vmem:[#allocation2 + $0x8] sm:$0xf0] }
  0x36   :  { %818 = vmatpush.bf16.msrb.mxu1 %v1717_v18  ;;  %v1749_v18 = vor.u32 %v2099_v3, %v1748_v0  ;;  %v1534_v44 = vld [vmem:[#allocation2 + $0x158] sm:$0xf0]  ;;  %v2060_v45 = vld [vmem:[#allocation2 + $0x1d4] sm:$0xf]  ;;  %v1369_v47 = vor.u32 %v2002_v37, %v1366_v38  ;;  %v2026_v49 = vld [vmem:[#allocation2 + $0xc4] sm:$0xf] }
  0x37   :  { %831 = vmatpush.bf16.msrb.mxu2 %v1781_v22  ;;  %v1553_v22 = vor.u32 %v2048_v7, %v1550_v8  ;;  %v2294_v32 = vpack.c.b16 %v175_v17, %v175_v17  ;;  %v1462_v50 = vld [vmem:[#allocation2 + $0xc8] sm:$0xf0]  ;;  %v2042_v53 = vld [vmem:[#allocation2 + $0x144] sm:$0xf]  ;;  %v2024_v62 = vld [vmem:[#allocation2 + $0xb4] sm:$0xf] }
  0x38   :  { %843 = vmatpush.bf16.msrb.mxu3 %v1409_v28  ;;  %v1542_v28 = vld [vmem:[#allocation2 + $0x168] sm:$0xf0]  ;;  %v2078_v55 = vld [vmem:[#allocation2 + $0x264] sm:$0xf]  ;;  %v1465_v61 = vor.u32 %v2026_v49, %v1462_v50  ;;  %v2040_v4 = vld [vmem:[#allocation2 + $0x134] sm:$0xf] }
  0x39   :  { %806 = vmatpush.bf16.msrb.mxu0 %v1645_v29  ;;  %v2292_v29 = vpack.c.b16 %v174_v11, %v174_v11  ;;  %v1545_v39 = vor.u32 %v2046_v25, %v1542_v28  ;;  %v1670_v56 = vld [vmem:[#allocation2 + $0x268] sm:$0xf0]  ;;  %v2076_v5 = vld [vmem:[#allocation2 + $0x254] sm:$0xf]  ;;  %v1662_v6 = vld [vmem:[#allocation2 + $0x258] sm:$0xf0] }
  0x3a   :  { %819 = vmatpush.bf16.msrb.mxu1 %v1709_v30  ;;  %v2062_v30 = vld [vmem:[#allocation2 + $0x1e4] sm:$0xf]  ;;  %v1590_v60 = vld [vmem:[#allocation2 + $0x1c8] sm:$0xf0]  ;;  %v1673_v0 = vor.u32 %v2078_v55, %v1670_v56  ;;  %v1518_v8 = vld [vmem:[#allocation2 + $0x138] sm:$0xf0] }
  0x3b   :  { %832 = vmatpush.bf16.msrb.mxu2 %v1773_v34  ;;  %v2028_v34 = vld [vmem:[#allocation2 + $0xd4] sm:$0xf]  ;;  %v1609_v43 = vor.u32 %v2062_v30, %v1606_v31  ;;  %v2022_v12 = vld [vmem:[#allocation2 + $0xa4] sm:$0xf]  ;;  %v1446_v14 = vld [vmem:[#allocation2 + $0xa8] sm:$0xf0] }
  0x3c   :  { %844 = vmatpush.bf16.msrb.mxu3 %v1401_v40  ;;  %v2044_v40 = vld [vmem:[#allocation2 + $0x154] sm:$0xf]  ;;  %v1473_v48 = vor.u32 %v2028_v34, %v1470_v36  ;;  %v2038_v17 = vld [vmem:[#allocation2 + $0x124] sm:$0xf]  ;;  %v1510_v21 = vld [vmem:[#allocation2 + $0x128] sm:$0xf0]  ;;  %v1449_v24 = vor.u32 %v2022_v12, %v1446_v14 }
  0x3d   :  { %807 = vmatpush.bf16.msrb.mxu0 %v1637_v41  ;;  %v2080_v41 = vld [vmem:[#allocation2 + $0x274] sm:$0xf]  ;;  %v1537_v52 = vor.u32 %v2044_v40, %v1534_v44  ;;  %v1574_v23 = vld [vmem:[#allocation2 + $0x1a8] sm:$0xf0]  ;;  %v1438_v25 = vld [vmem:[#allocation2 + $0x98] sm:$0xf0]  ;;  %v1513_v28 = vor.u32 %v2038_v17, %v1510_v21 }
  0x3e   :  { %820 = vmatpush.bf16.msrb.mxu1 %v1701_v42  ;;  %v1678_v42 = vld [vmem:[#allocation2 + $0x278] sm:$0xf0]  ;;  %v2056_v9 = vld [vmem:[#allocation2 + $0x1b4] sm:$0xf]  ;;  %v1430_v40 = vld [vmem:[#allocation2 + $0x88] sm:$0xf0] }
  0x3f   :  { %833 = vmatpush.bf16.msrb.mxu2 %v1765_v46  ;;  %v1598_v46 = vld [vmem:[#allocation2 + $0x1d8] sm:$0xf0]  ;;  %v1681_v51 = vor.u32 %v2080_v41, %v1678_v42  ;;  %v2036_v30 = vld [vmem:[#allocation2 + $0x114] sm:$0xf]  ;;  %v2034_v41 = vld [vmem:[#allocation2 + $0x104] sm:$0xf] }
  0x40   :  { %845 = vmatpush.bf16.msrb.mxu3 %v1393_v57  ;;  %v1601_v57 = vor.u32 %v2060_v45, %v1598_v46  ;;  %v2072_v31 = vld [vmem:[#allocation2 + $0x234] sm:$0xf]  ;;  %v1566_v37 = vld [vmem:[#allocation2 + $0x198] sm:$0xf0]  ;;  %v1494_v44 = vld [vmem:[#allocation2 + $0x108] sm:$0xf0] }
  0x41   :  { %808 = vmatpush.bf16.msrb.mxu0 %v1629_v58  ;;  %v1526_v58 = vld [vmem:[#allocation2 + $0x148] sm:$0xf0]  ;;  %v2052_v36 = vld [vmem:[#allocation2 + $0x194] sm:$0xf]  ;;  %v2070_v45 = vld [vmem:[#allocation2 + $0x224] sm:$0xf] }
  0x42   :  { %821 = vmatpush.bf16.msrb.mxu1 %v1693_v59  ;;  %v2058_v59 = vld [vmem:[#allocation2 + $0x1c4] sm:$0xf]  ;;  %v1529_v3 = vor.u32 %v2042_v53, %v1526_v58  ;;  %v1638_v46 = vld [vmem:[#allocation2 + $0x228] sm:$0xf0]  ;;  %v1742_v49 = vld [vmem:[#allocation2 + $0x2f8] sm:$0xf0] }
  0x43   :  { %834 = vmatpush.bf16.msrb.mxu2 %v1757_v63  ;;  %v1454_v63 = vld [vmem:[#allocation2 + $0xb8] sm:$0xf0]  ;;  %v1593_v7 = vor.u32 %v2058_v59, %v1590_v60  ;;  %v2112_v50 = vld [vmem:[#allocation2 + $0x374] sm:$0xf]  ;;  %v1558_v53 = vld [vmem:[#allocation2 + $0x188] sm:$0xf0]  ;;  %v1641_v56 = vor.u32 %v2070_v45, %v1638_v46 }
  0x44   :  { %846 = vmatpush.bf16.msrb.mxu3 %v1385_v10  ;;  %v1582_v10 = vld [vmem:[#allocation2 + $0x1b8] sm:$0xf0]  ;;  %v1457_v11 = vor.u32 %v2024_v62, %v1454_v63  ;;  %v2068_v59 = vld [vmem:[#allocation2 + $0x214] sm:$0xf]  ;;  %v2094_v62 = vld [vmem:[#allocation2 + $0x2e4] sm:$0xf] }
  0x45   :  { %809 = vmatpush.bf16.msrb.mxu0 %v1621_v15  ;;  %v1665_v15 = vor.u32 %v2076_v5, %v1662_v6  ;;  %v1585_v20 = vor.u32 %v2056_v9, %v1582_v10  ;;  %v1630_v60 = vld [vmem:[#allocation2 + $0x218] sm:$0xf0]  ;;  %v1734_v63 = vld [vmem:[#allocation2 + $0x2e8] sm:$0xf0]  ;;  %v2066_v6 = vld [vmem:[#allocation2 + $0x204] sm:$0xf] }
  0x46   :  { %822 = vmatpush.bf16.msrb.mxu1 %v1685_v16  ;;  %v1521_v16 = vor.u32 %v2040_v4, %v1518_v8  ;;  %v1798_v4 = vld [vmem:[#allocation2 + $0x368] sm:$0xf0]  ;;  %v1633_v5 = vor.u32 %v2068_v59, %v1630_v60  ;;  %v1868_v9 = vld [vmem:[%s2565_s3 + $0x70] sm:$0xf]  ;;  %v2129_v10 = vld [vmem:[%s2565_s3 + $0x74] sm:$0xf0] }
  0x47   :  { %835 = vmatpush.bf16.msrb.mxu2 %v1749_v18  ;;  %v2074_v18 = vld [vmem:[#allocation2 + $0x244] sm:$0xf]  ;;  %v1622_v8 = vld [vmem:[#allocation2 + $0x208] sm:$0xf0]  ;;  %v2092_v12 = vld [vmem:[#allocation2 + $0x2d4] sm:$0xf] }
  0x48   :  { %810 = vmatmul.bf16.vlgmr.msrb.gmra.mxu0 %v2290_v27  ;;  %847 = vmatpush.bf16.msrb.mxu3 %v1377_v33  ;;  %v1646_v33 = vld [vmem:[#allocation2 + $0x238] sm:$0xf0]  ;;  %v2082_v46 = vld [vmem:[#allocation2 + $0x284] sm:$0xf]  ;;  %v1852_v59 = vld [vmem:[%s2565_s3 + $0x50] sm:$0xf] }
  0x49   :  { %854 = vmatpush.bf16.msra.mxu0 %v1489_v19  ;;  %823 = vmatmul.bf16.vlgmr.msrb.gmra.mxu1 %v2292_v29  ;;  %v1654_v19 = vld [vmem:[#allocation2 + $0x248] sm:$0xf0]  ;;  %v1649_v42 = vor.u32 %v2072_v31, %v1646_v33  ;;  %v1726_v14 = vld [vmem:[#allocation2 + $0x2d8] sm:$0xf0]  ;;  %v2104_v31 = vld [vmem:[#allocation2 + $0x334] sm:$0xf] }
  0x4a   :  { %867 = vmatpush.bf16.msra.mxu1 %v1553_v22  ;;  %836 = vmatmul.bf16.vlgmr.msrb.gmra.mxu2 %v2294_v32  ;;  %v2054_v22 = vld [vmem:[#allocation2 + $0x1a4] sm:$0xf]  ;;  %v1790_v17 = vld [vmem:[#allocation2 + $0x358] sm:$0xf0]  ;;  %v1729_v21 = vor.u32 %v2092_v12, %v1726_v14  ;;  %v2125_v60 = vld [vmem:[%s2565_s3 + $0x54] sm:$0xf0] }
  0x4b   :  { %880 = vmatpush.bf16.msra.mxu2 %v1617_v26  ;;  %v1657_v26 = vor.u32 %v2074_v18, %v1654_v19  ;;  %v1577_v34 = vor.u32 %v2054_v22, %v1574_v23  ;;  %v1860_v18 = vld [vmem:[%s2565_s3 + $0x60] sm:$0xf]  ;;  %v2127_v19 = vld [vmem:[%s2565_s3 + $0x64] sm:$0xf0]  ;;  %v1718_v23 = vld [vmem:[#allocation2 + $0x2c8] sm:$0xf0] }
  0x4c   :  { %848 = vmatpush.bf16.msrb.mxu3 %v1369_v47  ;;  %v1569_v47 = vor.u32 %v2052_v36, %v1566_v37  ;;  %v1702_v36 = vld [vmem:[#allocation2 + $0x2a8] sm:$0xf0]  ;;  %v2102_v37 = vld [vmem:[#allocation2 + $0x324] sm:$0xf]  ;;  %v1828_v14 = vld [vmem:[%s2565_s3 + $0x20] sm:$0xf] }
  0x4d   :  { %855 = vmatpush.bf16.msra.mxu0 %v1481_v35  ;;  %v1502_v35 = vld [vmem:[#allocation2 + $0x118] sm:$0xf0] }
  0x4e   :  { %868 = vmatpush.bf16.msra.mxu1 %v1545_v39  ;;  %v2018_v39 = vld [vmem:[#allocation2 + $0x84] sm:$0xf] }
  0x4f   :  { %881 = vmatpush.bf16.msra.mxu2 %v1609_v43  ;;  %849 = vmatmul.bf16.vlgmr.msrb.gmra.mxu3 %v2275_v1  ;;  %v2020_v1 = vld [vmem:[#allocation2 + $0x94] sm:$0xf]  ;;  %v1505_v43 = vor.u32 %v2036_v30, %v1502_v35  ;;  %v1433_v55 = vor.u32 %v2018_v39, %v1430_v40  ;;  %v2086_v35 = vld [vmem:[#allocation2 + $0x2a4] sm:$0xf] }
  0x50   :  { %893 = vmatpush.bf16.msra.mxu3 %v1681_v51  ;;  %v1441_v38 = vor.u32 %v2020_v1, %v1438_v25  ;;  %v1806_v51 = vld [vmem:[#allocation2 + $0x378] sm:$0xf0]  ;;  %v2106_v1 = vld [vmem:[#allocation2 + $0x344] sm:$0xf]  ;;  %v1782_v25 = vld [vmem:[#allocation2 + $0x348] sm:$0xf0]  ;;  %v1705_v39 = vor.u32 %v2086_v35, %v1702_v36 }
  0x51   :  { %856 = vmatpush.bf16.msra.mxu0 %v1473_v48  ;;  %v2096_v48 = vld [vmem:[#allocation2 + $0x2f4] sm:$0xf] }
  0x52   :  { %869 = vmatpush.bf16.msra.mxu1 %v1537_v52  ;;  %v2050_v52 = vld [vmem:[#allocation2 + $0x184] sm:$0xf]  ;;  %v1745_v58 = vor.u32 %v2096_v48, %v1742_v49  ;;  %v2088_v30 = vld [vmem:[#allocation2 + $0x2b4] sm:$0xf]  ;;  %v1750_v49 = vld [vmem:[#allocation2 + $0x308] sm:$0xf0] }
  0x53   :  { %882 = vmatpush.bf16.msra.mxu2 %v1601_v57  ;;  %v1497_v57 = vor.u32 %v2034_v41, %v1494_v44  ;;  %v2084_v41 = vld [vmem:[#allocation2 + $0x294] sm:$0xf]  ;;  %v1758_v44 = vld [vmem:[#allocation2 + $0x318] sm:$0xf0]  ;;  %v2098_v48 = vld [vmem:[#allocation2 + $0x304] sm:$0xf] }
  0x54   :  { %894 = vmatpush.bf16.msra.mxu3 %v1673_v0  ;;  %v1561_v0 = vor.u32 %v2050_v52, %v1558_v53  ;;  %v1753_v53 = vor.u32 %v2098_v48, %v1750_v49  ;;  %v1934_v48 = vld [vmem:[%s2565_s3 + $0xf8] sm:$0xf0] }
  0x55   :  { %857 = vmatpush.bf16.msra.mxu0 %v1465_v61  ;;  %v1809_v61 = vor.u32 %v2112_v50, %v1806_v51  ;;  %v2128_v50 = vld [vmem:[%s2565_s3 + $0x74] sm:$0xf]  ;;  %v1870_v51 = vld [vmem:[%s2565_s3 + $0x78] sm:$0xf0] }
  0x56   :  { %870 = vmatpush.bf16.msra.mxu1 %v1529_v3  ;;  %v2110_v3 = vld [vmem:[#allocation2 + $0x364] sm:$0xf] }
  0x57   :  { %883 = vmatpush.bf16.msra.mxu2 %v1593_v7  ;;  %v1737_v7 = vor.u32 %v2094_v62, %v1734_v63  ;;  %v1853_v62 = vor.u32 %v2125_v60, %v1852_v59 }
  0x58   :  { %895 = vmatpush.bf16.msra.mxu3 %v1665_v15  ;;  %v2108_v15 = vld [vmem:[#allocation2 + $0x354] sm:$0xf] }
  0x59   :  { %858 = vmatpush.bf16.msra.mxu0 %v1457_v11  ;;  %v1801_v11 = vor.u32 %v2110_v3, %v1798_v4  ;;  %v1793_v22 = vor.u32 %v2108_v15, %v1790_v17  ;;  %v2122_v3 = vld [vmem:[%s2565_s3 + $0x44] sm:$0xf]  ;;  %v2119_v15 = vld [vmem:[%s2565_s3 + $0x24] sm:$0xf0]  ;;  %v1830_v17 = vld [vmem:[%s2565_s3 + $0x28] sm:$0xf0] }
  0x5a   :  { %871 = vmatpush.bf16.msra.mxu1 %v1521_v16  ;;  %v1869_v16 = vor.u32 %v2129_v10, %v1868_v9  ;;  %v2120_v9 = vld [vmem:[%s2565_s3 + $0x34] sm:$0xf] }
  0x5b   :  { %884 = vmatpush.bf16.msra.mxu2 %v1585_v20  ;;  %v1625_v20 = vor.u32 %v2066_v6, %v1622_v8  ;;  %v2121_v8 = vld [vmem:[%s2565_s3 + $0x34] sm:$0xf0] }
  0x5c   :  { %896 = vmatpush.bf16.msra.mxu3 %v1657_v26 }
  0x5d   :  { %859 = vmatpush.bf16.msra.mxu0 %v1449_v24  ;;  %v1861_v24 = vor.u32 %v2127_v19, %v1860_v18  ;;  %v1829_v18 = vor.u32 %v2119_v15, %v1828_v14  ;;  %v1900_v15 = vld [vmem:[%s2565_s3 + $0xb0] sm:$0xf] }
  0x5e   :  { %872 = vmatpush.bf16.msra.mxu1 %v1513_v28  ;;  %v1785_v28 = vor.u32 %v2106_v1, %v1782_v25  ;;  %v1812_v25 = vld [vmem:[%s2565_s3] sm:$0xf] }
  0x5f   :  { %885 = vmatpush.bf16.msra.mxu2 %v1577_v34 }
  0x60   :  { %897 = vmatpush.bf16.msra.mxu3 %v1649_v42  ;;  %v1694_v42 = vld [vmem:[#allocation2 + $0x298] sm:$0xf0] }
  0x61   :  { %860 = vmatpush.bf16.msra.mxu0 %v1441_v38  ;;  %v1766_v38 = vld [vmem:[#allocation2 + $0x328] sm:$0xf0] }
  0x62   :  { %873 = vmatpush.bf16.msra.mxu1 %v1505_v43  ;;  %v1769_v40 = vor.u32 %v2102_v37, %v1766_v38  ;;  %v2100_v43 = vld [vmem:[#allocation2 + $0x314] sm:$0xf] }
  0x63   :  { %886 = vmatpush.bf16.msra.mxu2 %v1569_v47  ;;  %v1761_v45 = vor.u32 %v2100_v43, %v1758_v44  ;;  %v1686_v47 = vld [vmem:[#allocation2 + $0x288] sm:$0xf0] }
  0x64   :  { %898 = vmatpush.bf16.msra.mxu3 %v1641_v56  ;;  %v1689_v52 = vor.u32 %v2082_v46, %v1686_v47  ;;  %v2126_v56 = vld [vmem:[%s2565_s3 + $0x64] sm:$0xf]  ;;  %v2144_v46 = vld [vmem:[%s2565_s3 + $0xf4] sm:$0xf] }
  0x65   :  { %861 = vmatpush.bf16.msra.mxu0 %v1433_v55  ;;  %v1873_v55 = vor.u32 %v2128_v50, %v1870_v51  ;;  %v1937_v51 = vor.u32 %v2144_v46, %v1934_v48 }
  0x66   :  { %874 = vmatpush.bf16.msra.mxu1 %v1497_v57  ;;  %v1862_v57 = vld [vmem:[%s2565_s3 + $0x68] sm:$0xf0] }
  0x67   :  { %887 = vmatpush.bf16.msra.mxu2 %v1561_v0  ;;  %v2123_v0 = vld [vmem:[%s2565_s3 + $0x44] sm:$0xf0] }
  0x68   :  { %862 = vmatmul.bf16.vlgmr.msra.gmra.mxu0 %v2277_v2  ;;  %899 = vmatpush.bf16.msra.mxu3 %v1633_v5  ;;  %v2090_v2 = vld [vmem:[#allocation2 + $0x2c4] sm:$0xf]  ;;  %v1846_v5 = vld [vmem:[%s2565_s3 + $0x48] sm:$0xf0] }
  0x69   :  { %906 = vmatpush.bf16.msrb.mxu0 %v1745_v58  ;;  %875 = vmatmul.bf16.vlgmr.msra.gmra.mxu1 %v2272_v54  ;;  %v1721_v26 = vor.u32 %v2090_v2, %v1718_v23  ;;  %v1710_v54 = vld [vmem:[#allocation2 + $0x2b8] sm:$0xf0]  ;;  %v1865_v58 = vor.u32 %v2126_v56, %v1862_v57  ;;  %v1849_v6 = vor.u32 %v2122_v3, %v1846_v5  ;;  %v2139_v3 = vld [vmem:[%s2565_s3 + $0xc4] sm:$0xf0] }
  0x6a   :  { %919 = vmatpush.bf16.msrb.mxu1 %v1809_v61  ;;  %888 = vmatmul.bf16.vlgmr.msra.gmra.mxu2 %v2280_v13  ;;  %v1774_v13 = vld [vmem:[#allocation2 + $0x338] sm:$0xf0]  ;;  %v1713_v33 = vor.u32 %v2088_v30, %v1710_v54  ;;  %v2124_v61 = vld [vmem:[%s2565_s3 + $0x54] sm:$0xf] }
  0x6b   :  { %1132 = vmatpush.bf16.msrb.mxu2 %v1869_v16  ;;  %v1777_v34 = vor.u32 %v2104_v31, %v1774_v13  ;;  %v2118_v16 = vld [vmem:[%s2565_s3 + $0x24] sm:$0xf]  ;;  %v1822_v23 = vld [vmem:[%s2565_s3 + $0x18] sm:$0xf0]  ;;  %v1814_v31 = vld [vmem:[%s2565_s3 + $0x8] sm:$0xf0] }
  0x6c   :  { %900 = vmatpush.bf16.msra.mxu3 %v1625_v20  ;;  %v1833_v19 = vor.u32 %v2118_v16, %v1830_v17  ;;  %v1820_v20 = vld [vmem:[%s2565_s3 + $0x10] sm:$0xf]  ;;  %v2137_v16 = vld [vmem:[%s2565_s3 + $0xb4] sm:$0xf0]  ;;  %v2136_v17 = vld [vmem:[%s2565_s3 + $0xb4] sm:$0xf] }
  0x6d   :  { %907 = vmatpush.bf16.msrb.mxu0 %v1737_v7  ;;  %v1836_v7 = vld [vmem:[%s2565_s3 + $0x30] sm:$0xf] }
  0x6e   :  { %920 = vmatpush.bf16.msrb.mxu1 %v1801_v11  ;;  %v1837_v10 = vor.u32 %v2121_v8, %v1836_v7  ;;  %v1838_v11 = vld [vmem:[%s2565_s3 + $0x38] sm:$0xf0]  ;;  %v1910_v7 = vld [vmem:[%s2565_s3 + $0xc8] sm:$0xf0] }
  0x6f   :  { %1133 = vmatpush.bf16.msrb.mxu2 %v1861_v24  ;;  %901 = vmatmul.bf16.vlgmr.msra.gmra.mxu3 %v2290_v27  ;;  %v1697_v27 = vor.u32 %v2084_v41, %v1694_v42  ;;  %v1841_v12 = vor.u32 %v2120_v9, %v1838_v11 }
  0x71   :  { %908 = vmatpush.bf16.msrb.mxu0 %v1729_v21  ;;  %v2117_v21 = vld [vmem:[%s2565_s3 + $0x14] sm:$0xf0] }
  0x72   :  { %921 = vmatpush.bf16.msrb.mxu1 %v1793_v22  ;;  %v2116_v22 = vld [vmem:[%s2565_s3 + $0x14] sm:$0xf]  ;;  %v1821_v2 = vor.u32 %v2117_v21, %v1820_v20 }
  0x73   :  { %1134 = vmatpush.bf16.msrb.mxu2 %v1853_v62  ;;  %v1825_v24 = vor.u32 %v2116_v22, %v1822_v23  ;;  %v2141_v62 = vld [vmem:[%s2565_s3 + $0xd4] sm:$0xf0]  ;;  %v1892_v22 = vld [vmem:[%s2565_s3 + $0xa0] sm:$0xf] }
  0x75   :  { %909 = vmatpush.bf16.msrb.mxu0 %v1721_v26  ;;  %v2115_v26 = vld [vmem:[%s2565_s3 + $0x4] sm:$0xf0] }
  0x76   :  { %922 = vmatpush.bf16.msrb.mxu1 %v1785_v28  ;;  %v2114_v28 = vld [vmem:[%s2565_s3 + $0x4] sm:$0xf]  ;;  %v1813_v54 = vor.u32 %v2115_v26, %v1812_v25 }
  0x77   :  { %v1817_v13 = vor.u32 %v2114_v28, %v1814_v31  ;;  %v2132_v31 = vld [vmem:[%s2565_s3 + $0x94] sm:$0xf] }
  0x79   :  { %910 = vmatpush.bf16.msrb.mxu0 %v1713_v33 }
  0x7a   :  { %923 = vmatpush.bf16.msrb.mxu1 %v1777_v34  ;;  %v2405_v34 = vld [vmem:[%s2564_s2] sm:$0x3] }
  0x7b   :  { %v161_v35 = vperm.slane %v2405_v34, 0 }
  0x7d   :  { %911 = vmatpush.bf16.msrb.mxu0 %v1705_v39 }
  0x7e   :  { %924 = vmatpush.bf16.msrb.mxu1 %v1769_v40 }
  0x81   :  { %912 = vmatpush.bf16.msrb.mxu0 %v1697_v27  ;;  %v1932_v27 = vld [vmem:[%s2565_s3 + $0xf0] sm:$0xf] }
  0x82   :  { %925 = vmatpush.bf16.msrb.mxu1 %v1761_v45  ;;  %v2145_v45 = vld [vmem:[%s2565_s3 + $0xf4] sm:$0xf0] }
  0x83   :  { %v1933_v47 = vor.u32 %v2145_v45, %v1932_v27 }
  0x85   :  { %913 = vmatpush.bf16.msrb.mxu0 %v1689_v52  ;;  %v1924_v52 = vld [vmem:[%s2565_s3 + $0xe0] sm:$0xf]  ;;  %1145 = vmatpush.bf16.msrb.mxu3 %v1933_v47 }
  0x86   :  { %926 = vmatpush.bf16.msrb.mxu1 %v1753_v53  ;;  %v2143_v53 = vld [vmem:[%s2565_s3 + $0xe4] sm:$0xf0] }
  0x87   :  { %v1925_v57 = vor.u32 %v2143_v53, %v1924_v52 }
  0x88   :  { %914 = vmatmul.bf16.vlgmr.msrb.gmra.mxu0 %v2292_v29  ;;  %v1854_v29 = vld [vmem:[%s2565_s3 + $0x58] sm:$0xf0] }
  0x89   :  { %1158 = vmatpush.bf16.msra.mxu0 %v1873_v55  ;;  %927 = vmatmul.bf16.vlgmr.msrb.gmra.mxu1 %v2294_v32  ;;  %v1857_v63 = vor.u32 %v2124_v61, %v1854_v29  ;;  %v1844_v32 = vld [vmem:[%s2565_s3 + $0x40] sm:$0xf]  ;;  %v2142_v55 = vld [vmem:[%s2565_s3 + $0xe4] sm:$0xf]  ;;  %v1916_v61 = vld [vmem:[%s2565_s3 + $0xd0] sm:$0xf] }
  0x8a   :  { %v1845_v4 = vor.u32 %v2123_v0, %v1844_v32  ;;  %1171 = vmatpush.bf16.msra.mxu1 %v1937_v51  ;;  %1146 = vmatpush.bf16.msrb.mxu3 %v1925_v57  ;;  %v2140_v29 = vld [vmem:[%s2565_s3 + $0xd4] sm:$0xf]  ;;  %v1918_v32 = vld [vmem:[%s2565_s3 + $0xd8] sm:$0xf0]  ;;  %v1908_v0 = vld [vmem:[%s2565_s3 + $0xc0] sm:$0xf] }
  0x8b   :  { %v1921_v5 = vor.u32 %v2140_v29, %v1918_v32  ;;  %v1909_v11 = vor.u32 %v2139_v3, %v1908_v0  ;;  %v2153_v29 = vld [vmem:[%s2567_s5 + $0x38] sm:$0xff]  ;;  %v2152_v32 = vld [vmem:[%s2567_s5 + $0x30] sm:$0xff]  ;;  %v2159_v0 = vld [vmem:[%s2567_s5 + $0x68] sm:$0xff] }
  0x8c   :  { %1135 = vmatpush.bf16.msrb.mxu2 %v1845_v4  ;;  %v2151_v3 = vld [vmem:[%s2567_s5 + $0x28] sm:$0xff] }
  0x8d   :  { %1159 = vmatpush.bf16.msra.mxu0 %v1865_v58  ;;  %v1926_v58 = vld [vmem:[%s2565_s3 + $0xe8] sm:$0xf0] }
  0x8e   :  { %v1929_v59 = vor.u32 %v2142_v55, %v1926_v58 }
  0x90   :  { %1136 = vmatpush.bf16.msrb.mxu2 %v1837_v10  ;;  %1172 = vmatpush.bf16.msra.mxu1 %v1929_v59 }
  0x91   :  { %1160 = vmatpush.bf16.msra.mxu0 %v1857_v63  ;;  %v1917_v63 = vor.u32 %v2141_v62, %v1916_v61  ;;  %v2161_v62 = vld [vmem:[%s2567_s5 + $0x78] sm:$0xff] }
  0x93   :  { %1147 = vmatpush.bf16.msrb.mxu3 %v1917_v63  ;;  %v2160_v63 = vld [vmem:[%s2567_s5 + $0x70] sm:$0xff] }
  0x94   :  { %1137 = vmatpush.bf16.msrb.mxu2 %v1829_v18  ;;  %1173 = vmatpush.bf16.msra.mxu1 %v1921_v5  ;;  %v1901_v18 = vor.u32 %v2137_v16, %v1900_v15  ;;  %v2150_v5 = vld [vmem:[%s2567_s5 + $0x20] sm:$0xff]  ;;  %v2148_v15 = vld [vmem:[%s2567_s5 + $0x10] sm:$0xff] }
  0x95   :  { %1161 = vmatpush.bf16.msra.mxu0 %v1849_v6  ;;  %v2138_v6 = vld [vmem:[%s2565_s3 + $0xc4] sm:$0xf] }
  0x96   :  { %v1913_v14 = vor.u32 %v2138_v6, %v1910_v7  ;;  %v2157_v6 = vld [vmem:[%s2567_s5 + $0x58] sm:$0xff]  ;;  %v2154_v16 = vld [vmem:[%s2567_s5 + $0x40] sm:$0xff] }
  0x97   :  { %1148 = vmatpush.bf16.msrb.mxu3 %v1909_v11  ;;  %v2149_v7 = vld [vmem:[%s2567_s5 + $0x18] sm:$0xff] }
  0x98   :  { %1138 = vmatpush.bf16.msrb.mxu2 %v1821_v2  ;;  %1174 = vmatpush.bf16.msra.mxu1 %v1913_v14  ;;  %v2135_v2 = vld [vmem:[%s2565_s3 + $0xa4] sm:$0xf0] }
  0x99   :  { %1162 = vmatpush.bf16.msra.mxu0 %v1841_v12  ;;  %v1893_v25 = vor.u32 %v2135_v2, %v1892_v22 }
  0x9b   :  { %1149 = vmatpush.bf16.msrb.mxu3 %v1901_v18  ;;  %v2146_v18 = vld [vmem:[%s2567_s5] sm:$0xff] }
  0x9c   :  { %1139 = vmatpush.bf16.msrb.mxu2 %v1813_v54  ;;  %v2133_v54 = vld [vmem:[%s2565_s3 + $0x94] sm:$0xf0] }
  0x9d   :  { %1163 = vmatpush.bf16.msra.mxu0 %v1833_v19  ;;  %v1902_v19 = vld [vmem:[%s2565_s3 + $0xb8] sm:$0xf0] }
  0x9e   :  { %v1905_v21 = vor.u32 %v2136_v17, %v1902_v19  ;;  %v2147_v17 = vld [vmem:[%s2567_s5 + $0x8] sm:$0xff]  ;;  %v966_v19 = vld [vmem:[%s2566_s4] sm:$0x3]  ;;  %s2222_s4 = smov [#allocation5]  }
  0x9f   :  { %1150 = vmatpush.bf16.msrb.mxu3 %v1893_v25  ;;  %v968_v2 = vperm.slane %v966_v19, 0  ;;  %s1350_s23 = sshll.u32 %s2222_s4, 4  ;;  %s1351_s23 = int_to_ptr.vmem [resolvable:$true] %s1350_s23 }
  0xa0   :  { %1175 = vmatpush.bf16.msra.mxu1 %v1905_v21  ;;  %1318 = vmatpush.bf16.msra.mxu2 %v2153_v29 }
  0xa1   :  { %1164 = vmatpush.bf16.msra.mxu0 %v1825_v24  ;;  %v2134_v24 = vld [vmem:[%s2565_s3 + $0xa4] sm:$0xf] }
  0xa4   :  { %1319 = vmatpush.bf16.msra.mxu2 %v2152_v32 }
  0xa5   :  { %v759_v1 = vpop.f32.mrf.mxu0  ;;  %1165 = vmatpush.bf16.msra.mxu0 %v1817_v13 }
  0xa6   :  { %v772_v30 = vpop.f32.mrf.mxu1  ;;  %v760_v39 = vadd.f32 %v759_v1, %v161_v35  ;;  %v1894_v1 = vld [vmem:[%s2565_s3 + $0xa8] sm:$0xf0] }
  0xa7   :  { %v1897_v26 = vor.u32 %v2134_v24, %v1894_v1 }
  0xa8   :  { %v773_v41 = vadd.f32 %v772_v30, %v760_v39  ;;  %v1884_v30 = vld [vmem:[%s2565_s3 + $0x90] sm:$0xf]  ;;  %1320 = vmatpush.bf16.msra.mxu2 %v2151_v3 }
  0xa9   :  { %1176 = vmatpush.bf16.msra.mxu1 %v1897_v26  ;;  %v1885_v13 = vor.u32 %v2133_v54, %v1884_v30 }
  0xab   :  { %1151 = vmatpush.bf16.msrb.mxu3 %v1885_v13  ;;  %v2166_v13 = vld [vmem:[%s2568_s6] ss:$0 sm:$0xff] }
  0xac   :  { %1321 = vmatpush.bf16.msra.mxu2 %v2150_v5 }
  0xad   :  { %v785_v33 = vpop.f32.mrf.mxu2  ;;  %v761_v36 = vpop.f32.mrf.mxu0 }
  0xae   :  { %v774_v37 = vpop.f32.mrf.mxu1  ;;  %v786_v43 = vadd.f32 %v785_v33, %v773_v41  ;;  %v1886_v33 = vld [vmem:[%s2565_s3 + $0x98] sm:$0xf0]  ;;  %v1876_v36 = vld [vmem:[%s2565_s3 + $0x80] sm:$0xf]  ;;  %v1878_v41 = vld [vmem:[%s2565_s3 + $0x88] sm:$0xf0] }
  0xaf   :  { %v1889_v35 = vor.u32 %v2132_v31, %v1886_v33  ;;  %v2131_v37 = vld [vmem:[%s2565_s3 + $0x84] sm:$0xf0] }
  0xb0   :  { %1322 = vmatpush.bf16.msra.mxu2 %v2149_v7 }
  0xb1   :  { %1177 = vmatpush.bf16.msra.mxu1 %v1889_v35 }
  0xb2   :  { %v798_v38 = vpop.f32.mrf.mxu3 }
  0xb3   :  { %v799_v44 = vadd.f32 %v798_v38, %v786_v43  ;;  %v2130_v38 = vld [vmem:[%s2565_s3 + $0x84] sm:$0xf] }
  0xb4   :  { %v1881_v43 = vor.u32 %v2130_v38, %v1878_v41  ;;  %1323 = vmatpush.bf16.msra.mxu2 %v2148_v15 }
  0xb5   :  { %v787_v40 = vpop.f32.mrf.mxu2 }
  0xb6   :  { %v1877_v40 = vor.u32 %v2131_v37, %v1876_v36  ;;  %1178 = vmatpush.bf16.msra.mxu1 %v1881_v43 }
  0xb8   :  { %1152 = vmatpush.bf16.msrb.mxu3 %v1877_v40  ;;  %1324 = vmatpush.bf16.msra.mxu2 %v2147_v17 }
  0xba   :  { %v800_v42 = vpop.f32.mrf.mxu3 }
  0xbc   :  { %1331 = vmatpush.bf16.msra.mxu3 %v2161_v62  ;;  %1325 = vmatpush.bf16.msra.mxu2 %v2146_v18 }
  0xc0   :  { %1332 = vmatpush.bf16.msra.mxu3 %v2160_v63 }
  0xc4   :  { %1333 = vmatpush.bf16.msra.mxu3 %v2159_v0 }
  0xc5   :  { %v811_v49 = vpop.f32.mrf.mxu0 }
  0xc6   :  { %v824_v50 = vpop.f32.mrf.mxu1  ;;  %v812_v56 = vadd.f32 %v811_v49, %v799_v44  ;;  %v162_v44 = vperm.slane %v2405_v34, 1 }
  0xc8   :  { %v825_v60 = vadd.f32 %v824_v50, %v812_v56 }
  0xcd   :  { %v837_v4 = vpop.f32.mrf.mxu2  ;;  %v813_v9 = vpop.f32.mrf.mxu0 }
  0xce   :  { %v838_v8 = vadd.f32 %v837_v4, %v825_v60  ;;  %v826_v10 = vpop.f32.mrf.mxu1  ;;  %v2158_v4 = vld [vmem:[%s2567_s5 + $0x60] sm:$0xff]  ;;  %v2156_v9 = vld [vmem:[%s2567_s5 + $0x50] sm:$0xff] }
  0xcf   :  { %1334 = vmatpush.bf16.msra.mxu3 %v2158_v4  ;;  %v2155_v10 = vld [vmem:[%s2567_s5 + $0x48] sm:$0xff] }
  0xd0   :  { %v932_v12 = vpack.c.bf16 %v838_v8, %v838_v8 }
  0xd2   :  { %1140 = vmatmul.bf16.vlgmr.msrb.gmra.mxu2 %v932_v12  ;;  %1166 = vmatmul.bf16.vlgmr.msra.gmra.mxu0 %v932_v12  ;;  %v850_v20 = vpop.f32.mrf.mxu3 }
  0xd3   :  { %v851_v47 = vadd.f32 %v850_v20, %v162_v44  ;;  %1335 = vmatpush.bf16.msra.mxu3 %v2157_v6  ;;  %v969_v20 = vperm.slane %v966_v19, 1 }
  0xd5   :  { %v839_v23 = vpop.f32.mrf.mxu2 }
  0xd7   :  { %1336 = vmatpush.bf16.msra.mxu3 %v2156_v9 }
  0xda   :  { %v852_v28 = vpop.f32.mrf.mxu3 }
  0xdb   :  { %1337 = vmatpush.bf16.msra.mxu3 %v2155_v10 }
  0xdf   :  { %1338 = vmatpush.bf16.msra.mxu3 %v2154_v16 }
  0xe5   :  { %v863_v39 = vpop.f32.mrf.mxu0 }
  0xe6   :  { %v876_v42 = vpop.f32.mrf.mxu1  ;;  %v864_v49 = vadd.f32 %v863_v39, %v851_v47 }
  0xe8   :  { %v877_v51 = vadd.f32 %v876_v42, %v864_v49 }
  0xed   :  { %v865_v27 = vpop.f32.mrf.mxu0  ;;  %v889_v45 = vpop.f32.mrf.mxu2 }
  0xee   :  { %v878_v46 = vpop.f32.mrf.mxu1  ;;  %v890_v53 = vadd.f32 %v889_v45, %v877_v51 }
  0xf2   :  { %v902_v48 = vpop.f32.mrf.mxu3 }
  0xf3   :  { %v903_v55 = vadd.f32 %v902_v48, %v890_v53 }
  0xf5   :  { %v891_v50 = vpop.f32.mrf.mxu2 }
  0xfa   :  { %v904_v52 = vpop.f32.mrf.mxu3 }
 0x105   :  { %v915_v56 = vpop.f32.mrf.mxu0 }
 0x106   :  { %v916_v57 = vadd.f32 %v915_v56, %v903_v55  ;;  %v928_v58 = vpop.f32.mrf.mxu1 }
 0x108   :  { %v929_v59 = vadd.f32 %v928_v58, %v916_v57 }
 0x10a   :  { %v933_v60 = vpack.c.bf16 %v929_v59, %v929_v59 }
 0x10c   :  { %1153 = vmatmul.bf16.vlgmr.msrb.gmra.mxu3 %v933_v60  ;;  %1179 = vmatmul.bf16.vlgmr.msra.gmra.mxu1 %v933_v60 }
 0x10d   :  { %v917_v61 = vpop.f32.mrf.mxu0 }
 0x10e   :  { %v930_v34 = vpop.f32.mrf.mxu1 }
 0x14f   :  { %v1167_v8 = vpop.f32.mrf.mxu0 }
 0x150   :  { %v1168_v21 = vadd.f32 %v1167_v8, %v969_v20 }
 0x155   :  { %v1141_v11 = vpop.f32.mrf.mxu2 }
 0x156   :  { %v1142_v1 = vadd.f32 %v1141_v11, %v968_v2 }
 0x157   :  { %v1169_v12 = vpop.f32.mrf.mxu0 }
 0x15d   :  { %v1143_v14 = vpop.f32.mrf.mxu2 }
 0x189   :  { %v1180_v22 = vpop.f32.mrf.mxu1 }
 0x18a   :  { %v1181_v23 = vadd.f32 %v1180_v22, %v1168_v21 }
 0x18c   :  { %v1185_v24 = vpack.c.bf16 %v1181_v23, %v1181_v23 }
 0x18e   :  { %1339 = vmatmul.bf16.vlgmr.msra.gmra.mxu3 %v1185_v24 }
 0x18f   :  { %v1154_v25 = vpop.f32.mrf.mxu3 }
 0x190   :  { %v1155_v26 = vadd.f32 %v1154_v25, %v1142_v1 }
 0x191   :  { %v1182_v28 = vpop.f32.mrf.mxu1 }
 0x192   :  { %v1184_v30 = vpack.c.bf16 %v1155_v26, %v1155_v26 }
 0x194   :  { %1326 = vmatmul.bf16.vlgmr.msra.gmra.mxu2 %v1184_v30 }
 0x197   :  { %v1156_v54 = vpop.f32.mrf.mxu3 }
 0x211   :  { %v1340_v31 = vpop.f32.mrf.mxu3 }
 0x217   :  { %v1327_v33 = vpop.f32.mrf.mxu2 }
 0x218   :  { %v1328_v35 = vadd.f32 %v2166_v13, %v1327_v33 }
 0x219   :  { %v1342_v36 = vpop.f32.mrf.mxu3 }
 0x21a   :  { %v1341_v37 = vadd.f32 %v1340_v31, %v1328_v35 }
 0x21c   :  { %1344 = vst [vmem:[#allocation5] sm:$0xff] %v1341_v37 }
 0x21d   :  { %1355 = dma.vmem_to_hbm [thread:$0]  %s1351_s23, 128, %s1353_s26, [#allocation4]  }
 0x21f   :  { %v1329_v38 = vpop.f32.mrf.mxu2 }
 0x220   :  { %2217 = dma.done.wait [#allocation4], 128  }
 0x221   :  { %2218 = vsyncadd [#allocation4], 4294967168 }
 0x222   :  { %1360 = vsyncpa [#allocation3], 1 }
 0x223   :  { %1361 = vsyncpa [#allocation4], 1 }

</bundles_post_ra>
